<compile_context>
chip_gen: v6e
topology: v6e:2x2x1
jax: 0.10.0
libtpu: 0.0.40
codegen_flags: <defaults>
</compile_context>

<pallas_src>
import functools

import jax
import jax.numpy as jnp
from jax.experimental import pallas as pl
from jax.experimental.pallas import tpu as pltpu

LANE = 128      # TPU vreg lane width (last dim)
SUBLANE = 8     # TPU vreg sublane width (second-to-last dim)


def _round_up(n: int, m: int) -> int:
    return ((n + m - 1) // m) * m


def mlp_kernel(x_ref, w1t_ref, b1_ref, w2t_ref, b2_ref, o_ref):
    # x: (TILE_B, I_pad), w1t: (I_pad, H_pad), b1: (1, H_pad),
    # w2t: (H_pad, I_pad), b2: (1, I_pad), o: (TILE_B, I_pad)
    x = x_ref[...]
    h = jnp.dot(x, w1t_ref[...], preferred_element_type=jnp.float32) + b1_ref[...]
    h = jnp.maximum(h, 0.0)                                   # ReLU (VPU)
    out = jnp.dot(h, w2t_ref[...], preferred_element_type=jnp.float32) + b2_ref[...]
    o_ref[...] = out.astype(o_ref.dtype)                      # lane-dense store


def prepare_params(w1, b1, w2, b2, *, dtype=jnp.float32):
    """One-time parameter prep (hoisted out of the hot path).

    Takes torch nn.Linear-convention params (w: (out, in), b: (out,)) and
    returns pre-transposed, lane-padded operands:
      w1t: (I_pad, H_pad), b1r: (1, H_pad), w2t: (H_pad, I_pad), b2r: (1, I_pad)
    Zero padding keeps the math exact: padded input lanes are zero, padded
    hidden units have zero weight + zero bias -> relu(0) = 0 -> contribute 0,
    padded output lanes are sliced off in the wrapper.
    """
    H, I = w1.shape
    assert w2.shape == (I, H) and b1.shape == (H,) and b2.shape == (I,)
    I_pad = _round_up(I, LANE)
    H_pad = _round_up(H, LANE)
    w1t = jnp.zeros((I_pad, H_pad), dtype).at[:I, :H].set(w1.T.astype(dtype))
    b1r = jnp.zeros((1, H_pad), dtype).at[:, :H].set(b1.astype(dtype)[None, :])
    w2t = jnp.zeros((H_pad, I_pad), dtype).at[:H, :I].set(w2.T.astype(dtype))
    b2r = jnp.zeros((1, I_pad), dtype).at[:, :I].set(b2.astype(dtype)[None, :])
    return (w1t, b1r, w2t, b2r), (I, H, I_pad, H_pad)


@functools.partial(jax.jit, static_argnames=("dims", "tile_b"))
def neural_net_forward(x, params, *, dims, tile_b=8):
    """x: (B, input_size). params/dims come from prepare_params()."""
    w1t, b1r, w2t, b2r = params
    I, H, I_pad, H_pad = dims
    B = x.shape[0]

    tile_b = max(SUBLANE, tile_b)
    B_pad = _round_up(B, tile_b)
    grid = (B_pad // tile_b,)

    # Minimal per-call glue: pad activations into the lane-dense slab.
    x_pad = jnp.pad(x.astype(w1t.dtype), ((0, B_pad - B), (0, I_pad - I)))

    flops = 4 * B_pad * I_pad * H_pad          # two dense matmuls
    bytes_accessed = 4 * (x_pad.size + w1t.size + b1r.size + w2t.size
                          + b2r.size + B_pad * I_pad)

    out_pad = pl.pallas_call(
        mlp_kernel,
        out_shape=jax.ShapeDtypeStruct((B_pad, I_pad), x.dtype),
        grid=grid,
        in_specs=[
            pl.BlockSpec((tile_b, I_pad), lambda i: (i, 0)),   # x: batch-tiled
            pl.BlockSpec((I_pad, H_pad), lambda i: (0, 0)),    # w1t: resident
            pl.BlockSpec((1, H_pad), lambda i: (0, 0)),        # b1: resident
            pl.BlockSpec((H_pad, I_pad), lambda i: (0, 0)),    # w2t: resident
            pl.BlockSpec((1, I_pad), lambda i: (0, 0)),        # b2: resident
        ],
        out_specs=pl.BlockSpec((tile_b, I_pad), lambda i: (i, 0)),
        compiler_params=pltpu.CompilerParams(
            dimension_semantics=("parallel",),      # batch axis -> megacore/dual-TC
            vmem_limit_bytes=32 * 1024 * 1024,      # explicit budget (v7x-safe)
        ),
        cost_estimate=pl.CostEstimate(
            flops=flops, transcendentals=0, bytes_accessed=bytes_accessed),
    )(x_pad, w1t, b1r, w2t, b2r)

    # Slice the lane-dense output slab back to the logical (B, input_size).
    return out_pad[:B, :I]


def init_linear_params(key, in_features, out_features):
    """Deterministic init mimicking torch.nn.Linear default (uniform +/- 1/sqrt(fan_in))."""
    kw, kb = jax.random.split(key)
    bound = 1.0 / jnp.sqrt(jnp.float32(in_features))
    w = jax.random.uniform(kw, (out_features, in_features), jnp.float32, -bound, bound)
    b = jax.random.uniform(kb, (out_features,), jnp.float32, -bound, bound)
    return w, b


if __name__ == "__main__":
    input_size = 2
    hidden_size = 32
    num_classes = 2   # defined in the torch __init__ but unused by forward

    key = jax.random.PRNGKey(0)
    k1, k2 = jax.random.split(key)
    w1, b1 = init_linear_params(k1, input_size, hidden_size)   # l1: (H, I), (H,)
    w2, b2 = init_linear_params(k2, hidden_size, input_size)   # l2: (I, H), (I,)

    # One-time prep outside the hot path: transpose + lane-pad the params.
    params, dims = prepare_params(w1, b1, w2, b2, dtype=jnp.float32)

    # Same XOR-style input as the reference script.
    x = jnp.array([[0, 0], [1, 0], [0, 1], [1, 1]], dtype=jnp.float32)

    out = neural_net_forward(x, params, dims=dims, tile_b=8)
    out = jax.block_until_ready(out)

    # Sanity check against a pure-JAX reference of the same math.
    ref = jnp.maximum(x @ w1.T + b1, 0.0) @ w2.T + b2
    assert out.shape == (4, input_size)
    assert jnp.allclose(out, ref, atol=1e-5, rtol=1e-5)

    print("KERNEL_OK")
</pallas_src>

<mosaic_0001>
module attributes {stable_mosaic.version = 11 : i64} {
  func.func @mlp_kernel(%arg0: i32, %arg1: memref<8x128xf32, #tpu.memory_space<vmem>>, %arg2: memref<128x128xf32, #tpu.memory_space<vmem>>, %arg3: memref<1x128xf32, #tpu.memory_space<vmem>>, %arg4: memref<128x128xf32, #tpu.memory_space<vmem>>, %arg5: memref<1x128xf32, #tpu.memory_space<vmem>>, %arg6: memref<8x128xf32, #tpu.memory_space<vmem>>) attributes {dimension_semantics = [#tpu.dimension_semantics<parallel>], iteration_bounds = array<i64: 1>, scalar_prefetch = 0 : i64, scratch_operands = 0 : i64, tpu.core_type = #tpu.core_type<tc>, window_params = [{transform_indices = @transform_0, window_bounds = array<i64: 8, 128>}, {pipeline_mode = #tpu.pipeline_mode<synchronous>, transform_indices = @transform_1, window_bounds = array<i64: 128, 128>}, {pipeline_mode = #tpu.pipeline_mode<synchronous>, transform_indices = @transform_2, window_bounds = array<i64: 1, 128>}, {pipeline_mode = #tpu.pipeline_mode<synchronous>, transform_indices = @transform_3, window_bounds = array<i64: 128, 128>}, {pipeline_mode = #tpu.pipeline_mode<synchronous>, transform_indices = @transform_4, window_bounds = array<i64: 1, 128>}, {transform_indices = @transform_5, window_bounds = array<i64: 8, 128>}]} {
    %c0 = arith.constant 0 : index
    %c0_0 = arith.constant 0 : index
    %0 = vector.load %arg1[%c0, %c0_0] : memref<8x128xf32, #tpu.memory_space<vmem>>, vector<8x128xf32>
    %c0_1 = arith.constant 0 : index
    %c0_2 = arith.constant 0 : index
    %1 = vector.load %arg2[%c0_1, %c0_2] : memref<128x128xf32, #tpu.memory_space<vmem>>, vector<128x128xf32>
    %cst = arith.constant dense<0.000000e+00> : vector<8x128xf32>
    %2 = tpu.matmul %0, %1, %cst {dimension_numbers = #tpu.dot_dimension_numbers<[1], [0], [0], [1], [0, 0, 1, 1], [], []>} : vector<8x128xf32>, vector<128x128xf32>, vector<8x128xf32> -> vector<8x128xf32>
    %c0_3 = arith.constant 0 : index
    %c0_4 = arith.constant 0 : index
    %3 = vector.load %arg3[%c0_3, %c0_4] : memref<1x128xf32, #tpu.memory_space<vmem>>, vector<1x128xf32>
    %4 = vector.broadcast %3 : vector<1x128xf32> to vector<8x128xf32>
    %5 = arith.addf %2, %4 : vector<8x128xf32>
    %cst_5 = arith.constant 0.000000e+00 : f32
    %6 = vector.broadcast %cst_5 : f32 to vector<8x128xf32>
    %7 = arith.maximumf %5, %6 : vector<8x128xf32>
    %c0_6 = arith.constant 0 : index
    %c0_7 = arith.constant 0 : index
    %8 = vector.load %arg4[%c0_6, %c0_7] : memref<128x128xf32, #tpu.memory_space<vmem>>, vector<128x128xf32>
    %cst_8 = arith.constant dense<0.000000e+00> : vector<8x128xf32>
    %9 = tpu.matmul %7, %8, %cst_8 {dimension_numbers = #tpu.dot_dimension_numbers<[1], [0], [0], [1], [0, 0, 1, 1], [], []>} : vector<8x128xf32>, vector<128x128xf32>, vector<8x128xf32> -> vector<8x128xf32>
    %c0_9 = arith.constant 0 : index
    %c0_10 = arith.constant 0 : index
    %10 = vector.load %arg5[%c0_9, %c0_10] : memref<1x128xf32, #tpu.memory_space<vmem>>, vector<1x128xf32>
    %11 = vector.broadcast %10 : vector<1x128xf32> to vector<8x128xf32>
    %12 = arith.addf %9, %11 : vector<8x128xf32>
    %c0_11 = arith.constant 0 : index
    %c0_12 = arith.constant 0 : index
    %13 = vector.load %arg6[%c0_11, %c0_12] : memref<8x128xf32, #tpu.memory_space<vmem>>, vector<8x128xf32>
    tpu.vector_store %arg6[%c0_11, %c0_12], %12 {strides = array<i32>} : memref<8x128xf32, #tpu.memory_space<vmem>>, vector<8x128xf32>,
    return
  }
  func.func @transform_0(%arg0: i32) -> (i32, i32) {
    %c0_i32 = arith.constant 0 : i32
    %c0_i32_0 = arith.constant 0 : i32
    return %arg0, %c0_i32 : i32, i32
  }
  func.func @transform_1(%arg0: i32) -> (i32, i32) {
    %c0_i32 = arith.constant 0 : i32
    %c0_i32_0 = arith.constant 0 : i32
    %c0_i32_1 = arith.constant 0 : i32
    return %c0_i32, %c0_i32_0 : i32, i32
  }
  func.func @transform_2(%arg0: i32) -> (i32, i32) {
    %c0_i32 = arith.constant 0 : i32
    %c0_i32_0 = arith.constant 0 : i32
    %c0_i32_1 = arith.constant 0 : i32
    return %c0_i32, %c0_i32_0 : i32, i32
  }
  func.func @transform_3(%arg0: i32) -> (i32, i32) {
    %c0_i32 = arith.constant 0 : i32
    %c0_i32_0 = arith.constant 0 : i32
    %c0_i32_1 = arith.constant 0 : i32
    return %c0_i32, %c0_i32_0 : i32, i32
  }
  func.func @transform_4(%arg0: i32) -> (i32, i32) {
    %c0_i32 = arith.constant 0 : i32
    %c0_i32_0 = arith.constant 0 : i32
    %c0_i32_1 = arith.constant 0 : i32
    return %c0_i32, %c0_i32_0 : i32, i32
  }
  func.func @transform_5(%arg0: i32) -> (i32, i32) {
    %c0_i32 = arith.constant 0 : i32
    %c0_i32_0 = arith.constant 0 : i32
    return %arg0, %c0_i32 : i32, i32
  }
}

</mosaic_0001>

<bundles_post_ra>
// kernel: neural_net_forward.1
= control target key start
LH: loop header
LB: loop body
LE: loop exit
PB: predicated region body
PF: predicated region fallthrough
CT: control target
= control target key end

     0   :  { %10 = vsyncpa [#allocation3], 0  ;;  %s487_s0 = inlined_call_operand.vmem [shape: f32[8,128], index: 0, kind: input, shape index: {}]   ;;  %s488_s1 = inlined_call_operand.hbm [shape: f32[128,128], index: 1, kind: input, shape index: {}]   ;;  %s489_s2 = inlined_call_operand.vmem [shape: f32[1,128], index: 2, kind: input, shape index: {}]   ;;  %s490_s3 = inlined_call_operand.hbm [shape: f32[128,128], index: 3, kind: input, shape index: {}]   ;;  %s491_s4 = inlined_call_operand.vmem [shape: f32[1,128], index: 4, kind: input, shape index: {}]   ;;  %s492_s5 = inlined_call_operand.vmem [shape: f32[8,128], index: 5, kind: output, shape index: {}]  }
   0x1   :  { %11 = vsyncpa [#allocation5], 0  ;;  %s399_s18 = smov [#allocation2]  }
   0x2   :  { %s19_s19 = sshll.u32 %s399_s18, 4  ;;  %s20_s19 = int_to_ptr.vmem [resolvable:$true] %s19_s19 }
   0x3   :  { %s363_s20 = scalar_lea.vmem %s20_s19, 2048  ;;  %p368_p1 = scmp.lt.s32.totalorder %s20_s19, %s20_s19 }
   0x4   :  { %p364_p0 = scmp.ne.s32.totalorder %s20_s19, %s363_s20  ;;  %p369_p2 = scmp.lt.s32.totalorder %s363_s20, %s363_s20 }
   0x6   :  { %p370_p3 = por %p369_p2, %p368_p1 }
   0x8   :  { %p371_p4 = pnand %p370_p3, %p364_p0 }
   0xa   :  { %374 = shalt.err (!%p371_p4)
}
   0xb   :  { %s400_s21 = smov 128   ;;  %s401_s22 = smov 8  }
   0xc   :  { %25 = dma.hbm_to_vmem [thread:$0]  %s488_s1, 2048, %s20_s19, [#allocation3], %s400_s21, %s400_s21, %s401_s22  }
   0xd   :  { %s402_s25 = smov [#allocation4]  }
   0xe   :  { %s33_s26 = sshll.u32 %s402_s25, 4  ;;  %s34_s26 = int_to_ptr.vmem [resolvable:$true] %s33_s26 }
   0xf   :  { %s383_s27 = scalar_lea.vmem %s34_s26, 2048  ;;  %p388_p6 = scmp.lt.s32.totalorder %s34_s26, %s34_s26 }
  0x10   :  { %p384_p5 = scmp.ne.s32.totalorder %s34_s26, %s383_s27  ;;  %p389_p7 = scmp.lt.s32.totalorder %s383_s27, %s383_s27 }
  0x12   :  { %p390_p8 = por %p389_p7, %p388_p6 }
  0x14   :  { %p391_p9 = pnand %p390_p8, %p384_p5 }
  0x16   :  { %394 = shalt.err (!%p391_p9)
}
  0x17   :  { %39 = dma.hbm_to_vmem [thread:$0]  %s490_s3, 2048, %s34_s26, [#allocation5], %s400_s21, %s400_s21, %s401_s22  }
  0x18   :  { %395 = dma.done.wait [#allocation3], 2048  }
  0x19   :  { %396 = vsyncadd [#allocation3], 4294965248 }
  0x1a   :  { %397 = dma.done.wait [#allocation5], 2048  }
  0x1b   :  { %398 = vsyncadd [#allocation5], 4294965248  ;;  %v403_v0 = vmov 0.0   ;;  %vm404_vm0 = vmmov 0   ;;  %v64_v1 = vld [vmem:[#allocation2 + $0x78] sm:$0xff]  ;;  %v63_v2 = vld [vmem:[#allocation2 + $0x70] sm:$0xff] }
  0x1c   :  { %279 = vmatprep.subr.mxu0 %v403_v0  ;;  %311 = vmatprep.mubr.msk.f32.mxu0 %vm404_vm0, %v403_v0  ;;  %v62_v3 = vld [vmem:[#allocation2 + $0x68] sm:$0xff]  ;;  %v61_v4 = vld [vmem:[#allocation2 + $0x60] sm:$0xff]  ;;  %v158_v5 = vld [vmem:[#allocation4 + $0x78] sm:$0xff] }
  0x1d   :  { %314 = vmatprep.subr.mxu1 %v403_v0  ;;  %346 = vmatprep.mubr.msk.f32.mxu1 %vm404_vm0, %v403_v0  ;;  %v60_v6 = vld [vmem:[#allocation2 + $0x58] sm:$0xff]  ;;  %v157_v7 = vld [vmem:[#allocation4 + $0x70] sm:$0xff]  ;;  %v156_v8 = vld [vmem:[#allocation4 + $0x68] sm:$0xff] }
  0x1e   :  { %280 = vmatpush3.msra.mxu0 %v64_v1  ;;  %315 = vmatpush3.msra.mxu1 %v158_v5  ;;  %v59_v9 = vld [vmem:[#allocation2 + $0x50] sm:$0xff]  ;;  %v155_v10 = vld [vmem:[#allocation4 + $0x60] sm:$0xff]  ;;  %v58_v11 = vld [vmem:[#allocation2 + $0x48] sm:$0xff] }
  0x1f   :  { %281 = vmatprep.subr.mxu0 %v403_v0  ;;  %316 = vmatprep.subr.mxu1 %v403_v0  ;;  %v154_v12 = vld [vmem:[#allocation4 + $0x58] sm:$0xff]  ;;  %v57_v13 = vld [vmem:[#allocation2 + $0x40] sm:$0xff]  ;;  %v153_v14 = vld [vmem:[#allocation4 + $0x50] sm:$0xff] }
  0x20   :  { %282 = vmatpush3.msra.mxu0 %v63_v2  ;;  %317 = vmatpush3.msra.mxu1 %v157_v7  ;;  %v56_v15 = vld [vmem:[#allocation2 + $0x38] sm:$0xff]  ;;  %v152_v16 = vld [vmem:[#allocation4 + $0x48] sm:$0xff]  ;;  %v55_v17 = vld [vmem:[#allocation2 + $0x30] sm:$0xff] }
  0x21   :  { %283 = vmatprep.subr.mxu0 %v403_v0  ;;  %318 = vmatprep.subr.mxu1 %v403_v0  ;;  %v151_v18 = vld [vmem:[#allocation4 + $0x40] sm:$0xff]  ;;  %v54_v19 = vld [vmem:[#allocation2 + $0x28] sm:$0xff]  ;;  %v150_v20 = vld [vmem:[#allocation4 + $0x38] sm:$0xff] }
  0x22   :  { %284 = vmatpush3.msra.mxu0 %v62_v3  ;;  %319 = vmatpush3.msra.mxu1 %v156_v8  ;;  %v53_v21 = vld [vmem:[#allocation2 + $0x20] sm:$0xff]  ;;  %v149_v22 = vld [vmem:[#allocation4 + $0x30] sm:$0xff]  ;;  %v52_v23 = vld [vmem:[#allocation2 + $0x18] sm:$0xff] }
  0x23   :  { %285 = vmatprep.subr.mxu0 %v403_v0  ;;  %320 = vmatprep.subr.mxu1 %v403_v0  ;;  %v148_v24 = vld [vmem:[#allocation4 + $0x28] sm:$0xff]  ;;  %v51_v25 = vld [vmem:[#allocation2 + $0x10] sm:$0xff]  ;;  %v147_v26 = vld [vmem:[#allocation4 + $0x20] sm:$0xff] }
  0x24   :  { %286 = vmatpush3.msra.mxu0 %v61_v4  ;;  %321 = vmatpush3.msra.mxu1 %v155_v10  ;;  %v50_v27 = vld [vmem:[#allocation2 + $0x8] sm:$0xff]  ;;  %v146_v28 = vld [vmem:[#allocation4 + $0x18] sm:$0xff]  ;;  %v49_v29 = vld [vmem:[#allocation2] sm:$0xff] }
  0x25   :  { %287 = vmatprep.subr.mxu0 %v403_v0  ;;  %322 = vmatprep.subr.mxu1 %v403_v0  ;;  %v48_v30 = vld [vmem:[%s487_s0] sm:$0xff]  ;;  %v145_v31 = vld [vmem:[#allocation4 + $0x10] sm:$0xff]  ;;  %v144_v32 = vld [vmem:[#allocation4 + $0x8] sm:$0xff] }
  0x26   :  { %288 = vmatpush3.msra.mxu0 %v60_v6  ;;  %323 = vmatpush3.msra.mxu1 %v154_v12  ;;  %v143_v33 = vld [vmem:[#allocation4] sm:$0xff] }
  0x27   :  { %289 = vmatprep.subr.mxu0 %v403_v0  ;;  %324 = vmatprep.subr.mxu1 %v403_v0  ;;  %v243_v34 = vld [vmem:[%s489_s2] ss:$0 sm:$0xff] }
  0x28   :  { %290 = vmatpush3.msra.mxu0 %v59_v9  ;;  %325 = vmatpush3.msra.mxu1 %v153_v14  ;;  %v244_v39 = vld [vmem:[%s491_s4] ss:$0 sm:$0xff] }
  0x29   :  { %291 = vmatprep.subr.mxu0 %v403_v0  ;;  %326 = vmatprep.subr.mxu1 %v403_v0 }
  0x2a   :  { %292 = vmatpush3.msra.mxu0 %v58_v11  ;;  %327 = vmatpush3.msra.mxu1 %v152_v16 }
  0x2b   :  { %293 = vmatprep.subr.mxu0 %v403_v0  ;;  %328 = vmatprep.subr.mxu1 %v403_v0 }
  0x2c   :  { %294 = vmatpush3.msra.mxu0 %v57_v13  ;;  %329 = vmatpush3.msra.mxu1 %v151_v18 }
  0x2d   :  { %295 = vmatprep.subr.mxu0 %v403_v0  ;;  %330 = vmatprep.subr.mxu1 %v403_v0 }
  0x2e   :  { %296 = vmatpush3.msra.mxu0 %v56_v15  ;;  %331 = vmatpush3.msra.mxu1 %v150_v20 }
  0x2f   :  { %297 = vmatprep.subr.mxu0 %v403_v0  ;;  %332 = vmatprep.subr.mxu1 %v403_v0 }
  0x30   :  { %298 = vmatpush3.msra.mxu0 %v55_v17  ;;  %333 = vmatpush3.msra.mxu1 %v149_v22 }
  0x31   :  { %299 = vmatprep.subr.mxu0 %v403_v0  ;;  %334 = vmatprep.subr.mxu1 %v403_v0 }
  0x32   :  { %300 = vmatpush3.msra.mxu0 %v54_v19  ;;  %335 = vmatpush3.msra.mxu1 %v148_v24 }
  0x33   :  { %301 = vmatprep.subr.mxu0 %v403_v0  ;;  %336 = vmatprep.subr.mxu1 %v403_v0 }
  0x34   :  { %302 = vmatpush3.msra.mxu0 %v53_v21  ;;  %337 = vmatpush3.msra.mxu1 %v147_v26 }
  0x35   :  { %303 = vmatprep.subr.mxu0 %v403_v0  ;;  %338 = vmatprep.subr.mxu1 %v403_v0 }
  0x36   :  { %304 = vmatpush3.msra.mxu0 %v52_v23  ;;  %339 = vmatpush3.msra.mxu1 %v146_v28 }
  0x37   :  { %305 = vmatprep.subr.mxu0 %v403_v0  ;;  %340 = vmatprep.subr.mxu1 %v403_v0 }
  0x38   :  { %306 = vmatpush3.msra.mxu0 %v51_v25  ;;  %341 = vmatpush3.msra.mxu1 %v145_v31 }
  0x39   :  { %307 = vmatprep.subr.mxu0 %v403_v0  ;;  %342 = vmatprep.subr.mxu1 %v403_v0 }
  0x3a   :  { %308 = vmatpush3.msra.mxu0 %v50_v27  ;;  %343 = vmatpush3.msra.mxu1 %v144_v32 }
  0x3b   :  { %309 = vmatprep.subr.mxu0 %v403_v0  ;;  %344 = vmatprep.subr.mxu1 %v403_v0 }
  0x3c   :  { %310 = vmatpush3.msra.mxu0 %v49_v29  ;;  %345 = vmatpush3.msra.mxu1 %v143_v33 }
  0x3d   :  { %312 = vmatmul.mubr.f32.vlgmr.msra.gmra.mxu0 %v48_v30 }
  0xfd   :  { %v138_v35 = vpop.f32.mrf.mxu0 }
  0xfe   :  { %v139_v36 = vadd.f32 %v243_v34, %v138_v35 }
  0xff   :  { %v313_v37 = vpop.f32.mrf.mxu0 }
 0x100   :  { %v142_v38 = vmax.f32 %v139_v36, 0.0 }
 0x102   :  { %347 = vmatmul.mubr.f32.vlgmr.msra.gmra.mxu1 %v142_v38 }
 0x1c2   :  { %v232_v40 = vpop.f32.mrf.mxu1 }
 0x1c3   :  { %v233_v41 = vadd.f32 %v244_v39, %v232_v40 }
 0x1c4   :  { %v348_v42 = vpop.f32.mrf.mxu1 }
 0x1c5   :  { %236 = vst [vmem:[%s492_s5] sm:$0xff] %v233_v41 }
 0x1c6   :  { %241 = vsyncpa [#allocation3], 1 }
 0x1c7   :  { %242 = vsyncpa [#allocation5], 1 }

</bundles_post_ra>
